<compile_context>
chip_gen: v5e
topology: v5e:2x2
jax: 0.10.0
libtpu: 0.0.40
codegen_flags: <defaults>
</compile_context>

<pallas_src>
import functools
import math

import jax
import jax.numpy as jnp
from jax.experimental import pallas as pl
from jax.experimental.pallas import tpu as pltpu

_LANE = 128      # vreg lane width — padded last dims are multiples of this
_SUBLANE = 16    # row-tile granularity (covers f32 (8) and bf16 (16) sublane packing)


def _round_up(v, m):
    return ((v + m - 1) // m) * m


def _cdiv(a, b):
    return (a + b - 1) // b


def _vmem_capacity_bytes():
    """Physical per-core VMEM; conservative v7x default if the query is unavailable."""
    try:
        cap = getattr(pltpu.get_tpu_info(), "vmem_capacity_bytes", None)
        if cap:
            return int(cap)
    except Exception:
        pass
    return 64 << 20


def _ffn_kernel(x_ref, w1_ref, b1_ref, w2_ref, b2_ref, o_ref, acc_ref, *, approx_gelu):
    """One (row_tile x Ht) slab of Linear->GELU->Linear; f32 accumulation over H slabs."""
    hi = pl.program_id(1)

    # MXU operands in bf16, accumulation / bias / GELU in f32.
    x = x_ref[...].astype(w1_ref.dtype)                                   # (TM, Dp)
    h = jnp.dot(x, w1_ref[...], preferred_element_type=jnp.float32)       # (TM, Ht) f32
    h = h + b1_ref[...]
    h = jax.nn.gelu(h, approximate=approx_gelu)                           # tanh -> EUP slot
    part = jnp.dot(h.astype(w2_ref.dtype), w2_ref[...],
                   preferred_element_type=jnp.float32)                    # (TM, Dp) f32

    @pl.when(hi == 0)
    def _init():
        acc_ref[...] = part

    @pl.when(hi != 0)
    def _accum():
        acc_ref[...] += part

    @pl.when(hi == pl.num_programs(1) - 1)
    def _finalize():
        o_ref[...] = (acc_ref[...] + b2_ref[...]).astype(o_ref.dtype)


def make_ffn_plan(rows, dim, hidden_dim, *, x_dtype=jnp.float32, out_dtype=jnp.float32,
                  compute_dtype=jnp.bfloat16, gelu_approximate=True):
    """Static tiling/VMEM plan derived from the problem size and the chip's VMEM."""
    vmem_cap = _vmem_capacity_bytes()
    cb = jnp.dtype(compute_dtype).itemsize
    xb = jnp.dtype(x_dtype).itemsize
    ob = jnp.dtype(out_dtype).itemsize

    Dp = _round_up(dim, _LANE)

    # H slab: whole hidden dim resident when its (double-buffered) weight slabs fit a
    # fraction of VMEM; otherwise tile the reduction axis.
    Ht = _round_up(hidden_dim, _LANE)
    w_budget = (vmem_cap * 3) // 8
    while Ht > 4 * _LANE and 2 * (2 * Dp * Ht * cb + Ht * 4) > w_budget:
        Ht = _round_up(_cdiv(Ht, 2), _LANE)
    Hp = _round_up(hidden_dim, Ht)        # exact multiple of Ht -> no ragged H slab
    h_steps = Hp // Ht

    # Row tile: as large as the hidden-intermediate budget allows, split >= 2 ways when
    # there is enough work (v7x has 2 TensorCores), never larger than the problem.
    row_budget = (vmem_cap * 3) // 8
    per_row = Ht * (4 + cb) + Dp * (4 + 2 * xb + 2 * ob)  # h(f32)+h(bf16) + acc + x/out bufs
    row_tile = 1024
    while row_tile > _SUBLANE and row_tile * per_row > row_budget:
        row_tile //= 2
    if rows > _SUBLANE:
        row_tile = min(row_tile, _round_up(_cdiv(rows, 2), _SUBLANE))
    row_tile = max(_SUBLANE, min(row_tile, _round_up(rows, _SUBLANE)))

    wbuf = 1 if h_steps == 1 else 2       # constant-index weights are single-buffered
    vmem_est = (2 * row_tile * Dp * xb            # x tiles (double-buffered)
                + 2 * row_tile * Dp * ob          # out tiles (double-buffered)
                + row_tile * Dp * 4               # f32 accumulator scratch
                + wbuf * 2 * Dp * Ht * cb         # w1 + w2 slabs
                + wbuf * Ht * 4 + Dp * 4          # biases
                + row_tile * Ht * (4 + cb))       # hidden f32 + its bf16 shadow
    vmem_limit = int(min(max(2 * vmem_est, 8 << 20), (vmem_cap * 7) // 8))

    return dict(dim=dim, hidden_dim=hidden_dim, Dp=Dp, Hp=Hp, Ht=Ht,
                row_tile=row_tile, h_steps=h_steps, vmem_limit=vmem_limit,
                compute_dtype=compute_dtype, gelu_approximate=gelu_approximate)


def prepare_ffn_params(w1, b1, w2, b2, plan):
    """One-time lane padding + bf16 cast of the parameters (hoisted out of the per-call path)."""
    D, H = plan["dim"], plan["hidden_dim"]
    Dp, Hp = plan["Dp"], plan["Hp"]
    cdt = plan["compute_dtype"]
    w1p = jnp.pad(w1, ((0, Dp - D), (0, Hp - H))).astype(cdt)
    w2p = jnp.pad(w2, ((0, Hp - H), (0, Dp - D))).astype(cdt)
    b1p = jnp.pad(b1, (0, Hp - H)).reshape(1, Hp).astype(jnp.float32)
    b2p = jnp.pad(b2, (0, Dp - D)).reshape(1, Dp).astype(jnp.float32)
    return w1p, b1p, w2p, b2p


def feedforward_apply(x, params, plan):
    """x: (..., dim) in its original dtype; params from prepare_ffn_params."""
    w1p, b1p, w2p, b2p = params
    D, Dp, Hp, Ht = plan["dim"], plan["Dp"], plan["Hp"], plan["Ht"]
    row_tile, vmem_limit = plan["row_tile"], plan["vmem_limit"]

    lead_shape = x.shape[:-1]
    rows = math.prod(lead_shape)
    x2 = x.reshape(rows, D)
    if Dp != D:
        # Lane padding only (no row padding, no dtype round trip). Padded w1 rows are zero,
        # so the extra input columns are neutral.
        x2 = jnp.pad(x2, ((0, 0), (0, Dp - D)))

    row_steps = _cdiv(rows, row_tile)     # ragged last row tile is clipped by Pallas
    h_steps = Hp // Ht
    grid = (row_steps, h_steps)
    kernel = functools.partial(_ffn_kernel, approx_gelu=plan["gelu_approximate"])

    def call(single_buffer_const):
        def wspec(shape, imap, const):
            if const and single_buffer_const:
                return pl.BlockSpec(shape, imap, pipeline_mode=pl.Buffered(1))
            return pl.BlockSpec(shape, imap)

        in_specs = [
            pl.BlockSpec((row_tile, Dp), lambda i, h: (i, 0)),              # x row tile
            wspec((Dp, Ht), lambda i, h: (0, h), const=(h_steps == 1)),     # w1 slab
            wspec((1, Ht), lambda i, h: (0, h), const=(h_steps == 1)),      # b1 slab
            wspec((Ht, Dp), lambda i, h: (h, 0), const=(h_steps == 1)),     # w2 slab
            wspec((1, Dp), lambda i, h: (0, 0), const=True),                # b2 (constant)
        ]
        out_spec = pl.BlockSpec((row_tile, Dp), lambda i, h: (i, 0))

        return pl.pallas_call(
            kernel,
            out_shape=jax.ShapeDtypeStruct((rows, Dp), x.dtype),
            grid_spec=pltpu.PrefetchScalarGridSpec(
                num_scalar_prefetch=0,
                grid=grid,
                in_specs=in_specs,
                out_specs=out_spec,
                scratch_shapes=[pltpu.VMEM((row_tile, Dp), jnp.float32)],
            ),
            compiler_params=pltpu.CompilerParams(
                dimension_semantics=("parallel", "arbitrary"),
                vmem_limit_bytes=vmem_limit,
            ),
        )(x2, w1p, b1p, w2p, b2p)

    try:
        out2 = call(True)
    except Exception:
        # Fallback for environments where pipeline_mode=pl.Buffered(1) is not accepted.
        out2 = call(False)

    out = out2 if Dp == D else out2[:, :D]
    return out.reshape(*lead_shape, D)


def feedforward_pallas(x, w1, b1, w2, b2, **plan_kwargs):
    """Convenience wrapper: plan + param prep + apply in one call."""
    rows = math.prod(x.shape[:-1])
    plan = make_ffn_plan(rows, x.shape[-1], w1.shape[1],
                         x_dtype=x.dtype, out_dtype=x.dtype, **plan_kwargs)
    params = prepare_ffn_params(w1, b1, w2, b2, plan)
    return feedforward_apply(x, params, plan)


def feedforward_ref(x, w1, b1, w2, b2):
    h = jnp.einsum("bnd,dh->bnh", x, w1) + b1
    h = jax.nn.gelu(h, approximate=False)   # PyTorch nn.GELU default (exact erf)
    return jnp.einsum("bnh,hd->bnd", h, w2) + b2


if __name__ == "__main__":
    # Module config: num_tokens=8, dim=32, hidden_dim=64, dropout=0.0, is_SCL=False
    B, N, D, Hdim = 2, 8, 32, 64

    key = jax.random.PRNGKey(0)
    kx, kw1, kb1, kw2, kb2 = jax.random.split(key, 5)

    x = jax.random.normal(kx, (B, N, D), dtype=jnp.float32)

    # Deterministic param init (PyTorch Linear-style uniform bounds).
    bound1 = 1.0 / math.sqrt(D)
    w1 = jax.random.uniform(kw1, (D, Hdim), jnp.float32, -bound1, bound1)
    b1 = jax.random.uniform(kb1, (Hdim,), jnp.float32, -bound1, bound1)
    bound2 = 1.0 / math.sqrt(Hdim)
    w2 = jax.random.uniform(kw2, (Hdim, D), jnp.float32, -bound2, bound2)
    b2 = jax.random.uniform(kb2, (D,), jnp.float32, -bound2, bound2)

    # One-time parameter preparation (pad + bf16 cast hoisted out of the per-call path).
    plan = make_ffn_plan(B * N, D, Hdim, x_dtype=x.dtype, out_dtype=x.dtype)
    params = prepare_ffn_params(w1, b1, w2, b2, plan)

    out = feedforward_apply(x, params, plan)
    out = jax.block_until_ready(out)

    ref = feedforward_ref(x, w1, b1, w2, b2)
    assert out.shape == (B, N, D)
    # bf16 MXU operands (f32 accumulation) + tanh-approx GELU -> loosened tolerance.
    assert jnp.allclose(out, ref, atol=2e-2, rtol=2e-2), (
        f"mismatch vs reference, max abs err={float(jnp.max(jnp.abs(out - ref)))}")

    print("KERNEL_OK")
</pallas_src>

<mosaic_0001>
module attributes {stable_mosaic.version = 11 : i64} {
  func.func @_ffn_kernel(%arg0: i32, %arg1: i32, %arg2: memref<16x128xf32, #tpu.memory_space<vmem>>, %arg3: memref<128x128xbf16, #tpu.memory_space<vmem>>, %arg4: memref<1x128xf32, #tpu.memory_space<vmem>>, %arg5: memref<128x128xbf16, #tpu.memory_space<vmem>>, %arg6: memref<1x128xf32, #tpu.memory_space<vmem>>, %arg7: memref<16x128xf32, #tpu.memory_space<vmem>>, %arg8: memref<16x128xf32, #tpu.memory_space<vmem>>) attributes {dimension_semantics = [#tpu.dimension_semantics<parallel>, #tpu.dimension_semantics<arbitrary>], iteration_bounds = array<i64: 1, 1>, scalar_prefetch = 0 : i64, scratch_operands = 1 : i64, tpu.core_type = #tpu.core_type<tc>, window_params = [{transform_indices = @transform_0, window_bounds = array<i64: 16, 128>}, {pipeline_mode = #tpu.pipeline_mode<synchronous>, transform_indices = @transform_1, window_bounds = array<i64: 128, 128>}, {pipeline_mode = #tpu.pipeline_mode<synchronous>, transform_indices = @transform_2, window_bounds = array<i64: 1, 128>}, {pipeline_mode = #tpu.pipeline_mode<synchronous>, transform_indices = @transform_3, window_bounds = array<i64: 128, 128>}, {pipeline_mode = #tpu.pipeline_mode<synchronous>, transform_indices = @transform_4, window_bounds = array<i64: 1, 128>}, {transform_indices = @transform_5, window_bounds = array<i64: 16, 128>}]} {
    %c0 = arith.constant 0 : index
    %c0_0 = arith.constant 0 : index
    %0 = vector.load %arg2[%c0, %c0_0] : memref<16x128xf32, #tpu.memory_space<vmem>>, vector<16x128xf32>
    %1 = arith.truncf %0 : vector<16x128xf32> to vector<16x128xbf16>
    %c0_1 = arith.constant 0 : index
    %c0_2 = arith.constant 0 : index
    %2 = vector.load %arg3[%c0_1, %c0_2] : memref<128x128xbf16, #tpu.memory_space<vmem>>, vector<128x128xbf16>
    %cst = arith.constant dense<0.000000e+00> : vector<16x128xf32>
    %3 = tpu.matmul %1, %2, %cst {dimension_numbers = #tpu.dot_dimension_numbers<[1], [0], [0], [1], [0, 0, 1, 1], [], []>} : vector<16x128xbf16>, vector<128x128xbf16>, vector<16x128xf32> -> vector<16x128xf32>
    %c0_3 = arith.constant 0 : index
    %c0_4 = arith.constant 0 : index
    %4 = vector.load %arg4[%c0_3, %c0_4] : memref<1x128xf32, #tpu.memory_space<vmem>>, vector<1x128xf32>
    %5 = vector.broadcast %4 : vector<1x128xf32> to vector<16x128xf32>
    %6 = arith.addf %3, %5 : vector<16x128xf32>
    %7 = arith.mulf %6, %6 : vector<16x128xf32>
    %8 = arith.mulf %6, %7 : vector<16x128xf32>
    %cst_5 = arith.constant 4.471500e-02 : f32
    %9 = vector.broadcast %cst_5 : f32 to vector<16x128xf32>
    %10 = arith.mulf %9, %8 : vector<16x128xf32>
    %11 = arith.addf %6, %10 : vector<16x128xf32>
    %cst_6 = arith.constant 0.797884583 : f32
    %12 = vector.broadcast %cst_6 : f32 to vector<16x128xf32>
    %13 = arith.mulf %12, %11 : vector<16x128xf32>
    %14 = math.tanh %13 : vector<16x128xf32>
    %cst_7 = arith.constant 1.000000e+00 : f32
    %15 = vector.broadcast %cst_7 : f32 to vector<16x128xf32>
    %16 = arith.addf %15, %14 : vector<16x128xf32>
    %cst_8 = arith.constant 5.000000e-01 : f32
    %17 = vector.broadcast %cst_8 : f32 to vector<16x128xf32>
    %18 = arith.mulf %17, %16 : vector<16x128xf32>
    %19 = arith.mulf %6, %18 : vector<16x128xf32>
    %20 = arith.truncf %19 : vector<16x128xf32> to vector<16x128xbf16>
    %c0_9 = arith.constant 0 : index
    %c0_10 = arith.constant 0 : index
    %21 = vector.load %arg5[%c0_9, %c0_10] : memref<128x128xbf16, #tpu.memory_space<vmem>>, vector<128x128xbf16>
    %cst_11 = arith.constant dense<0.000000e+00> : vector<16x128xf32>
    %22 = tpu.matmul %20, %21, %cst_11 {dimension_numbers = #tpu.dot_dimension_numbers<[1], [0], [0], [1], [0, 0, 1, 1], [], []>} : vector<16x128xbf16>, vector<128x128xbf16>, vector<16x128xf32> -> vector<16x128xf32>
    %c0_i32 = arith.constant 0 : i32
    %23 = arith.cmpi eq, %arg1, %c0_i32 : i32
    %24 = arith.extui %23 : i1 to i32
    %c0_i32_12 = arith.constant 0 : i32
    %25 = arith.cmpi ne, %24, %c0_i32_12 : i32
    scf.if %25 {
      %c0_17 = arith.constant 0 : index
      %c0_18 = arith.constant 0 : index
      %32 = vector.load %arg8[%c0_17, %c0_18] : memref<16x128xf32, #tpu.memory_space<vmem>>, vector<16x128xf32>
      tpu.vector_store %arg8[%c0_17, %c0_18], %22 {strides = array<i32>} : memref<16x128xf32, #tpu.memory_space<vmem>>, vector<16x128xf32>,
    } else {
    }
    %c0_i32_13 = arith.constant 0 : i32
    %26 = arith.cmpi ne, %arg1, %c0_i32_13 : i32
    %27 = arith.extui %26 : i1 to i32
    %c0_i32_14 = arith.constant 0 : i32
    %28 = arith.cmpi ne, %27, %c0_i32_14 : i32
    scf.if %28 {
      %c0_17 = arith.constant 0 : index
      %c0_18 = arith.constant 0 : index
      %32 = vector.load %arg8[%c0_17, %c0_18] : memref<16x128xf32, #tpu.memory_space<vmem>>, vector<16x128xf32>
      %33 = arith.addf %32, %22 : vector<16x128xf32>
      %c0_19 = arith.constant 0 : index
      %c0_20 = arith.constant 0 : index
      %34 = vector.load %arg8[%c0_19, %c0_20] : memref<16x128xf32, #tpu.memory_space<vmem>>, vector<16x128xf32>
      tpu.vector_store %arg8[%c0_19, %c0_20], %33 {strides = array<i32>} : memref<16x128xf32, #tpu.memory_space<vmem>>, vector<16x128xf32>,
    } else {
    }
    %c0_i32_15 = arith.constant 0 : i32
    %29 = arith.cmpi eq, %arg1, %c0_i32_15 : i32
    %30 = arith.extui %29 : i1 to i32
    %c0_i32_16 = arith.constant 0 : i32
    %31 = arith.cmpi ne, %30, %c0_i32_16 : i32
    scf.if %31 {
      %c0_17 = arith.constant 0 : index
      %c0_18 = arith.constant 0 : index
      %32 = vector.load %arg8[%c0_17, %c0_18] : memref<16x128xf32, #tpu.memory_space<vmem>>, vector<16x128xf32>
      %c0_19 = arith.constant 0 : index
      %c0_20 = arith.constant 0 : index
      %33 = vector.load %arg6[%c0_19, %c0_20] : memref<1x128xf32, #tpu.memory_space<vmem>>, vector<1x128xf32>
      %34 = vector.broadcast %33 : vector<1x128xf32> to vector<16x128xf32>
      %35 = arith.addf %32, %34 : vector<16x128xf32>
      %c0_21 = arith.constant 0 : index
      %c0_22 = arith.constant 0 : index
      %36 = vector.load %arg7[%c0_21, %c0_22] : memref<16x128xf32, #tpu.memory_space<vmem>>, vector<16x128xf32>
      tpu.vector_store %arg7[%c0_21, %c0_22], %35 {strides = array<i32>} : memref<16x128xf32, #tpu.memory_space<vmem>>, vector<16x128xf32>,
    } else {
    }
    return
  }
  func.func @transform_0(%arg0: i32, %arg1: i32) -> (i32, i32) {
    %c0_i32 = arith.constant 0 : i32
    %c0_i32_0 = arith.constant 0 : i32
    return %arg0, %c0_i32 : i32, i32
  }
  func.func @transform_1(%arg0: i32, %arg1: i32) -> (i32, i32) {
    %c0_i32 = arith.constant 0 : i32
    %c0_i32_0 = arith.constant 0 : i32
    return %c0_i32, %arg1 : i32, i32
  }
  func.func @transform_2(%arg0: i32, %arg1: i32) -> (i32, i32) {
    %c0_i32 = arith.constant 0 : i32
    %c0_i32_0 = arith.constant 0 : i32
    return %c0_i32, %arg1 : i32, i32
  }
  func.func @transform_3(%arg0: i32, %arg1: i32) -> (i32, i32) {
    %c0_i32 = arith.constant 0 : i32
    %c0_i32_0 = arith.constant 0 : i32
    return %arg1, %c0_i32 : i32, i32
  }
  func.func @transform_4(%arg0: i32, %arg1: i32) -> (i32, i32) {
    %c0_i32 = arith.constant 0 : i32
    %c0_i32_0 = arith.constant 0 : i32
    %c0_i32_1 = arith.constant 0 : i32
    return %c0_i32, %c0_i32_0 : i32, i32
  }
  func.func @transform_5(%arg0: i32, %arg1: i32) -> (i32, i32) {
    %c0_i32 = arith.constant 0 : i32
    %c0_i32_0 = arith.constant 0 : i32
    return %arg0, %c0_i32 : i32, i32
  }
}

module attributes {stable_mosaic.version = 11 : i64} {
  func.func @_ffn_kernel(%arg0: i32, %arg1: i32, %arg2: memref<16x128xf32, #tpu.memory_space<vmem>>, %arg3: memref<128x128xbf16, #tpu.memory_space<vmem>>, %arg4: memref<1x128xf32, #tpu.memory_space<vmem>>, %arg5: memref<128x128xbf16, #tpu.memory_space<vmem>>, %arg6: memref<1x128xf32, #tpu.memory_space<vmem>>, %arg7: memref<16x128xf32, #tpu.memory_space<vmem>>, %arg8: memref<16x128xf32, #tpu.memory_space<vmem>>) attributes {dimension_semantics = [#tpu.dimension_semantics<parallel>, #tpu.dimension_semantics<arbitrary>], iteration_bounds = array<i64: 1, 1>, scalar_prefetch = 0 : i64, scratch_operands = 1 : i64, tpu.core_type = #tpu.core_type<tc>, window_params = [{transform_indices = @transform_0, window_bounds = array<i64: 16, 128>}, {transform_indices = @transform_1, window_bounds = array<i64: 128, 128>}, {transform_indices = @transform_2, window_bounds = array<i64: 1, 128>}, {transform_indices = @transform_3, window_bounds = array<i64: 128, 128>}, {pipeline_mode = #tpu.pipeline_mode<synchronous>, transform_indices = @transform_4, window_bounds = array<i64: 1, 128>}, {transform_indices = @transform_5, window_bounds = array<i64: 16, 128>}]} {
    %c0 = arith.constant 0 : index
    %c0_0 = arith.constant 0 : index
    %0 = vector.load %arg2[%c0, %c0_0] : memref<16x128xf32, #tpu.memory_space<vmem>>, vector<16x128xf32>
    %1 = arith.truncf %0 : vector<16x128xf32> to vector<16x128xbf16>
    %c0_1 = arith.constant 0 : index
    %c0_2 = arith.constant 0 : index
    %2 = vector.load %arg3[%c0_1, %c0_2] : memref<128x128xbf16, #tpu.memory_space<vmem>>, vector<128x128xbf16>
    %cst = arith.constant dense<0.000000e+00> : vector<16x128xf32>
    %3 = tpu.matmul %1, %2, %cst {dimension_numbers = #tpu.dot_dimension_numbers<[1], [0], [0], [1], [0, 0, 1, 1], [], []>} : vector<16x128xbf16>, vector<128x128xbf16>, vector<16x128xf32> -> vector<16x128xf32>
    %c0_3 = arith.constant 0 : index
    %c0_4 = arith.constant 0 : index
    %4 = vector.load %arg4[%c0_3, %c0_4] : memref<1x128xf32, #tpu.memory_space<vmem>>, vector<1x128xf32>
    %5 = vector.broadcast %4 : vector<1x128xf32> to vector<16x128xf32>
    %6 = arith.addf %3, %5 : vector<16x128xf32>
    %7 = arith.mulf %6, %6 : vector<16x128xf32>
    %8 = arith.mulf %6, %7 : vector<16x128xf32>
    %cst_5 = arith.constant 4.471500e-02 : f32
    %9 = vector.broadcast %cst_5 : f32 to vector<16x128xf32>
    %10 = arith.mulf %9, %8 : vector<16x128xf32>
    %11 = arith.addf %6, %10 : vector<16x128xf32>
    %cst_6 = arith.constant 0.797884583 : f32
    %12 = vector.broadcast %cst_6 : f32 to vector<16x128xf32>
    %13 = arith.mulf %12, %11 : vector<16x128xf32>
    %14 = math.tanh %13 : vector<16x128xf32>
    %cst_7 = arith.constant 1.000000e+00 : f32
    %15 = vector.broadcast %cst_7 : f32 to vector<16x128xf32>
    %16 = arith.addf %15, %14 : vector<16x128xf32>
    %cst_8 = arith.constant 5.000000e-01 : f32
    %17 = vector.broadcast %cst_8 : f32 to vector<16x128xf32>
    %18 = arith.mulf %17, %16 : vector<16x128xf32>
    %19 = arith.mulf %6, %18 : vector<16x128xf32>
    %20 = arith.truncf %19 : vector<16x128xf32> to vector<16x128xbf16>
    %c0_9 = arith.constant 0 : index
    %c0_10 = arith.constant 0 : index
    %21 = vector.load %arg5[%c0_9, %c0_10] : memref<128x128xbf16, #tpu.memory_space<vmem>>, vector<128x128xbf16>
    %cst_11 = arith.constant dense<0.000000e+00> : vector<16x128xf32>
    %22 = tpu.matmul %20, %21, %cst_11 {dimension_numbers = #tpu.dot_dimension_numbers<[1], [0], [0], [1], [0, 0, 1, 1], [], []>} : vector<16x128xbf16>, vector<128x128xbf16>, vector<16x128xf32> -> vector<16x128xf32>
    %c0_i32 = arith.constant 0 : i32
    %23 = arith.cmpi eq, %arg1, %c0_i32 : i32
    %24 = arith.extui %23 : i1 to i32
    %c0_i32_12 = arith.constant 0 : i32
    %25 = arith.cmpi ne, %24, %c0_i32_12 : i32
    scf.if %25 {
      %c0_17 = arith.constant 0 : index
      %c0_18 = arith.constant 0 : index
      %32 = vector.load %arg8[%c0_17, %c0_18] : memref<16x128xf32, #tpu.memory_space<vmem>>, vector<16x128xf32>
      tpu.vector_store %arg8[%c0_17, %c0_18], %22 {strides = array<i32>} : memref<16x128xf32, #tpu.memory_space<vmem>>, vector<16x128xf32>,
    } else {
    }
    %c0_i32_13 = arith.constant 0 : i32
    %26 = arith.cmpi ne, %arg1, %c0_i32_13 : i32
    %27 = arith.extui %26 : i1 to i32
    %c0_i32_14 = arith.constant 0 : i32
    %28 = arith.cmpi ne, %27, %c0_i32_14 : i32
    scf.if %28 {
      %c0_17 = arith.constant 0 : index
      %c0_18 = arith.constant 0 : index
      %32 = vector.load %arg8[%c0_17, %c0_18] : memref<16x128xf32, #tpu.memory_space<vmem>>, vector<16x128xf32>
      %33 = arith.addf %32, %22 : vector<16x128xf32>
      %c0_19 = arith.constant 0 : index
      %c0_20 = arith.constant 0 : index
      %34 = vector.load %arg8[%c0_19, %c0_20] : memref<16x128xf32, #tpu.memory_space<vmem>>, vector<16x128xf32>
      tpu.vector_store %arg8[%c0_19, %c0_20], %33 {strides = array<i32>} : memref<16x128xf32, #tpu.memory_space<vmem>>, vector<16x128xf32>,
    } else {
    }
    %c0_i32_15 = arith.constant 0 : i32
    %29 = arith.cmpi eq, %arg1, %c0_i32_15 : i32
    %30 = arith.extui %29 : i1 to i32
    %c0_i32_16 = arith.constant 0 : i32
    %31 = arith.cmpi ne, %30, %c0_i32_16 : i32
    scf.if %31 {
      %c0_17 = arith.constant 0 : index
      %c0_18 = arith.constant 0 : index
      %32 = vector.load %arg8[%c0_17, %c0_18] : memref<16x128xf32, #tpu.memory_space<vmem>>, vector<16x128xf32>
      %c0_19 = arith.constant 0 : index
      %c0_20 = arith.constant 0 : index
      %33 = vector.load %arg6[%c0_19, %c0_20] : memref<1x128xf32, #tpu.memory_space<vmem>>, vector<1x128xf32>
      %34 = vector.broadcast %33 : vector<1x128xf32> to vector<16x128xf32>
      %35 = arith.addf %32, %34 : vector<16x128xf32>
      %c0_21 = arith.constant 0 : index
      %c0_22 = arith.constant 0 : index
      %36 = vector.load %arg7[%c0_21, %c0_22] : memref<16x128xf32, #tpu.memory_space<vmem>>, vector<16x128xf32>
      tpu.vector_store %arg7[%c0_21, %c0_22], %35 {strides = array<i32>} : memref<16x128xf32, #tpu.memory_space<vmem>>, vector<16x128xf32>,
    } else {
    }
    return
  }
  func.func @transform_0(%arg0: i32, %arg1: i32) -> (i32, i32) {
    %c0_i32 = arith.constant 0 : i32
    %c0_i32_0 = arith.constant 0 : i32
    return %arg0, %c0_i32 : i32, i32
  }
  func.func @transform_1(%arg0: i32, %arg1: i32) -> (i32, i32) {
    %c0_i32 = arith.constant 0 : i32
    %c0_i32_0 = arith.constant 0 : i32
    return %c0_i32, %arg1 : i32, i32
  }
  func.func @transform_2(%arg0: i32, %arg1: i32) -> (i32, i32) {
    %c0_i32 = arith.constant 0 : i32
    %c0_i32_0 = arith.constant 0 : i32
    return %c0_i32, %arg1 : i32, i32
  }
  func.func @transform_3(%arg0: i32, %arg1: i32) -> (i32, i32) {
    %c0_i32 = arith.constant 0 : i32
    %c0_i32_0 = arith.constant 0 : i32
    return %arg1, %c0_i32 : i32, i32
  }
  func.func @transform_4(%arg0: i32, %arg1: i32) -> (i32, i32) {
    %c0_i32 = arith.constant 0 : i32
    %c0_i32_0 = arith.constant 0 : i32
    %c0_i32_1 = arith.constant 0 : i32
    return %c0_i32, %c0_i32_0 : i32, i32
  }
  func.func @transform_5(%arg0: i32, %arg1: i32) -> (i32, i32) {
    %c0_i32 = arith.constant 0 : i32
    %c0_i32_0 = arith.constant 0 : i32
    return %arg0, %c0_i32 : i32, i32
  }
}

</mosaic_0001>

<bundles_post_ra>
// kernel: tpu_custom_call.1
= control target key start
LH: loop header
LB: loop body
LE: loop exit
PB: predicated region body
PF: predicated region fallthrough
CT: control target
= control target key end

     0   :  { %10 = vsyncpa [#allocation4], 0  ;;  %s557_s0 = inlined_call_operand.hbm [shape: f32[16,128], index: 0, kind: input, shape index: {}]   ;;  %s558_s1 = inlined_call_operand.hbm [shape: bf16[128,128], index: 1, kind: input, shape index: {}]   ;;  %s559_s2 = inlined_call_operand.vmem [shape: f32[1,128], index: 2, kind: input, shape index: {}]   ;;  %s560_s3 = inlined_call_operand.hbm [shape: bf16[128,128], index: 3, kind: input, shape index: {}]   ;;  %s561_s4 = inlined_call_operand.vmem [shape: f32[1,128], index: 4, kind: input, shape index: {}]   ;;  %s562_s5 = inlined_call_operand.hbm [shape: f32[16,128], index: 5, kind: output, shape index: {}]  }
   0x1   :  { %11 = vsyncpa [#allocation7], 0  ;;  %s30_s20 = sshll.u32 %s558_s1, 4  ;;  %s31_s20 = int_to_ptr.hbm [resolvable:$true] %s30_s20 }
   0x2   :  { %12 = vsyncpa [#allocation5], 0  ;;  %s495_s21 = smov [#allocation6]   ;;  %s17_s25 = sshll.u32 %s557_s0, 4  ;;  %s18_s25 = int_to_ptr.hbm [resolvable:$true] %s17_s25 }
   0x3   :  { %s32_s22 = sshll.u32 %s495_s21, 4  ;;  %s496_s26 = smov 64   ;;  %s33_s22 = int_to_ptr.vmem [resolvable:$true] %s32_s22 }
   0x4   :  { %s497_s27 = smov 4   ;;  %s498_s28 = smov [#allocation3]  }
   0x5   :  { %38 = dma.hbm_to_vmem [thread:$0]  %s31_s20, 1024, %s33_s22, [#allocation7], %s496_s26, %s496_s26, %s497_s27  }
   0x6   :  { %s19_s29 = sshll.u32 %s498_s28, 4  ;;  %s499_s30 = smov 128   ;;  %s20_s29 = int_to_ptr.vmem [resolvable:$true] %s19_s29 }
   0x7   :  { %s500_s6 = smov 8   ;;  %s45_s8 = sshll.u32 %s560_s3, 4  ;;  %s46_s8 = int_to_ptr.hbm [resolvable:$true] %s45_s8 }
   0x8   :  { %25 = dma.hbm_to_vmem [thread:$0]  %s18_s25, 256, %s20_s29, [#allocation4], %s499_s30, %s499_s30, %s500_s6  }
   0x9   :  { %s501_s9 = smov [#allocation8]  }
   0xa   :  { %s47_s0 = sshll.u32 %s501_s9, 4  ;;  %s48_s0 = int_to_ptr.vmem [resolvable:$true] %s47_s0 }
   0xb   :  { %53 = dma.hbm_to_vmem [thread:$0]  %s46_s8, 1024, %s48_s0, [#allocation7], %s496_s26, %s496_s26, %s497_s27  }
   0xc   :  { %489 = dma.done.wait [#allocation4], 256  }
   0xd   :  { %490 = vsyncadd [#allocation4], 4294967040 }
   0xe   :  { %491 = dma.done.wait [#allocation7], 2048  }
   0xf   :  { %492 = vsyncadd [#allocation7], 4294965248  ;;  %v370_v0 = vld [vmem:[#allocation6 + $0x38] sm:$0xff]  ;;  %v369_v1 = vld [vmem:[#allocation6 + $0x30] sm:$0xff]  ;;  %s502_s12 = smov [#allocation9]   ;;  %s285_s16 = sshll.u32 %s562_s5, 4  ;;  %s286_s16 = int_to_ptr.hbm [resolvable:$true] %s285_s16 }
  0x10   :  { %139 = vmatpush.bf16.msra.mxu0 %v370_v0  ;;  %v368_v2 = vld [vmem:[#allocation6 + $0x28] sm:$0xff]  ;;  %v367_v3 = vld [vmem:[#allocation6 + $0x20] sm:$0xff]  ;;  %v366_v4 = vld [vmem:[#allocation6 + $0x18] sm:$0xff]  ;;  %s283_s13 = sshll.u32 %s502_s12, 4  ;;  %s284_s13 = int_to_ptr.vmem [resolvable:$true] %s283_s13 }
  0x11   :  { %v365_v5 = vld [vmem:[#allocation6 + $0x10] sm:$0xff]  ;;  %v364_v6 = vld [vmem:[#allocation6 + $0x8] sm:$0xff]  ;;  %v363_v7 = vld [vmem:[#allocation6] sm:$0xff] }
  0x12   :  { %v68_v8 = vld [vmem:[#allocation3] sm:$0xff]  ;;  %v69_v9 = vld [vmem:[#allocation3 + $0x8] sm:$0xff]  ;;  %v376_v13 = vld [vmem:[#allocation8 + $0x28] sm:$0xff] }
  0x13   :  { %v70_v10 = vpack.c.bf16 %v69_v9, %v68_v8  ;;  %v378_v11 = vld [vmem:[#allocation8 + $0x38] sm:$0xff]  ;;  %v377_v12 = vld [vmem:[#allocation8 + $0x30] sm:$0xff]  ;;  %v375_v14 = vld [vmem:[#allocation8 + $0x20] sm:$0xff] }
  0x14   :  { %140 = vmatpush.bf16.msra.mxu0 %v369_v1  ;;  %236 = vmatpush.bf16.msra.mxu1 %v378_v11  ;;  %v374_v15 = vld [vmem:[#allocation8 + $0x18] sm:$0xff]  ;;  %v373_v16 = vld [vmem:[#allocation8 + $0x10] sm:$0xff]  ;;  %v372_v17 = vld [vmem:[#allocation8 + $0x8] sm:$0xff] }
  0x15   :  { %v387_v18 = vld [vmem:[%s559_s2] ss:$0 sm:$0xff]  ;;  %v371_v19 = vld [vmem:[#allocation8] sm:$0xff] }
  0x16   :  { %v388_v43 = vld [vmem:[%s561_s4] ss:$0 sm:$0xff] }
  0x18   :  { %141 = vmatpush.bf16.msra.mxu0 %v368_v2  ;;  %237 = vmatpush.bf16.msra.mxu1 %v377_v12 }
  0x1c   :  { %142 = vmatpush.bf16.msra.mxu0 %v367_v3  ;;  %238 = vmatpush.bf16.msra.mxu1 %v376_v13 }
  0x20   :  { %143 = vmatpush.bf16.msra.mxu0 %v366_v4  ;;  %239 = vmatpush.bf16.msra.mxu1 %v375_v14 }
  0x24   :  { %144 = vmatpush.bf16.msra.mxu0 %v365_v5  ;;  %240 = vmatpush.bf16.msra.mxu1 %v374_v15 }
  0x28   :  { %145 = vmatpush.bf16.msra.mxu0 %v364_v6  ;;  %241 = vmatpush.bf16.msra.mxu1 %v373_v16 }
  0x2c   :  { %146 = vmatpush.bf16.msra.mxu0 %v363_v7  ;;  %242 = vmatpush.bf16.msra.mxu1 %v372_v17 }
  0x2f   :  { %147 = vmatmul.bf16.vlgmr.msra.gmra.mxu0 %v70_v10 }
  0x30   :  { %243 = vmatpush.bf16.msra.mxu1 %v371_v19 }
  0xac   :  { %v148_v20 = vpop.f32.mrf.mxu0 }
  0xad   :  { %v149_v21 = vadd.f32 %v387_v18, %v148_v20 }
  0xaf   :  { %v153_v22 = vmul.f32 %v149_v21, %v149_v21 }
  0xb1   :  { %v155_v23 = vmul.f32 %v153_v22, %v149_v21 }
  0xb3   :  { %v157_v24 = vmul.f32 0.044715, %v155_v23 }
  0xb4   :  { %v150_v25 = vpop.f32.mrf.mxu0 }
  0xb5   :  { %v159_v26 = vadd.f32 %v157_v24, %v149_v21  ;;  %v151_v27 = vadd.f32 %v387_v18, %v150_v25 }
  0xb7   :  { %v154_v28 = vmul.f32 %v151_v27, %v151_v27  ;;  %v161_v29 = vmul.f32 0.7978846, %v159_v26 }
  0xb9   :  { %v156_v30 = vmul.f32 %v154_v28, %v151_v27  ;;  %389 = vtanh.f32 %v161_v29 }
  0xbb   :  { %v158_v31 = vmul.f32 0.044715, %v156_v30 }
  0xbd   :  { %v160_v32 = vadd.f32 %v158_v31, %v151_v27 }
  0xbf   :  { %v162_v33 = vmul.f32 0.7978846, %v160_v32  ;;  %v390_v34 = vpop.eup %389 }
  0xc0   :  { %v165_v35 = vadd.f32 1.0, %v390_v34 }
  0xc1   :  { %391 = vtanh.f32 %v162_v33 }
  0xc2   :  { %v167_v38 = vmul.f32 0.5, %v165_v35 }
  0xc4   :  { %v169_v40 = vmul.f32 %v167_v38, %v149_v21 }
  0xc7   :  { %v392_v36 = vpop.eup %391 }
  0xc8   :  { %v166_v37 = vadd.f32 1.0, %v392_v36 }
  0xca   :  { %v168_v39 = vmul.f32 0.5, %v166_v37 }
  0xcc   :  { %v170_v41 = vmul.f32 %v168_v39, %v151_v27 }
  0xce   :  { %v171_v42 = vpack.c.bf16 %v170_v41, %v169_v40 }
  0xd0   :  { %244 = vmatmul.bf16.vlgmr.msra.gmra.mxu1 %v171_v42 }
 0x14d   :  { %v245_v44 = vpop.f32.mrf.mxu1 }
 0x14e   :  { %v275_v45 = vadd.f32 %v388_v43, %v245_v44 }
 0x150   :  { %277 = vst [vmem:[#allocation9] sm:$0xff] %v275_v45 }
 0x155   :  { %v247_v46 = vpop.f32.mrf.mxu1 }
 0x156   :  { %v276_v47 = vadd.f32 %v388_v43, %v247_v46 }
 0x158   :  { %278 = vst [vmem:[#allocation9 + $0x8] sm:$0xff] %v276_v47 }
 0x159   :  { %291 = dma.vmem_to_hbm [thread:$0]  %s284_s13, 256, %s286_s16, [#allocation5], %s499_s30, %s499_s30, %s500_s6  }
 0x15a   :  { %493 = dma.done.wait [#allocation5], 256  }
 0x15b   :  { %494 = vsyncadd [#allocation5], 4294967040 }
 0x15c   :  { %296 = vsyncpa [#allocation4], 1 }
 0x15d   :  { %297 = vsyncpa [#allocation7], 1 }
 0x15e   :  { %298 = vsyncpa [#allocation5], 1 }

// kernel: tpu_custom_call.1
= control target key start
LH: loop header
LB: loop body
LE: loop exit
PB: predicated region body
PF: predicated region fallthrough
CT: control target
= control target key end

     0   :  { %10 = vsyncpa [#allocation4], 0  ;;  %s557_s0 = inlined_call_operand.hbm [shape: f32[16,128], index: 0, kind: input, shape index: {}]   ;;  %s558_s1 = inlined_call_operand.hbm [shape: bf16[128,128], index: 1, kind: input, shape index: {}]   ;;  %s559_s2 = inlined_call_operand.vmem [shape: f32[1,128], index: 2, kind: input, shape index: {}]   ;;  %s560_s3 = inlined_call_operand.hbm [shape: bf16[128,128], index: 3, kind: input, shape index: {}]   ;;  %s561_s4 = inlined_call_operand.vmem [shape: f32[1,128], index: 4, kind: input, shape index: {}]   ;;  %s562_s5 = inlined_call_operand.hbm [shape: f32[16,128], index: 5, kind: output, shape index: {}]  }
   0x1   :  { %11 = vsyncpa [#allocation7], 0  ;;  %s30_s20 = sshll.u32 %s558_s1, 4  ;;  %s31_s20 = int_to_ptr.hbm [resolvable:$true] %s30_s20 }
   0x2   :  { %12 = vsyncpa [#allocation5], 0  ;;  %s495_s21 = smov [#allocation6]   ;;  %s17_s25 = sshll.u32 %s557_s0, 4  ;;  %s18_s25 = int_to_ptr.hbm [resolvable:$true] %s17_s25 }
   0x3   :  { %s32_s22 = sshll.u32 %s495_s21, 4  ;;  %s496_s26 = smov 64   ;;  %s33_s22 = int_to_ptr.vmem [resolvable:$true] %s32_s22 }
   0x4   :  { %s497_s27 = smov 4   ;;  %s498_s28 = smov [#allocation3]  }
   0x5   :  { %38 = dma.hbm_to_vmem [thread:$0]  %s31_s20, 1024, %s33_s22, [#allocation7], %s496_s26, %s496_s26, %s497_s27  }
   0x6   :  { %s19_s29 = sshll.u32 %s498_s28, 4  ;;  %s499_s30 = smov 128   ;;  %s20_s29 = int_to_ptr.vmem [resolvable:$true] %s19_s29 }
   0x7   :  { %s500_s6 = smov 8   ;;  %s45_s8 = sshll.u32 %s560_s3, 4  ;;  %s46_s8 = int_to_ptr.hbm [resolvable:$true] %s45_s8 }
   0x8   :  { %25 = dma.hbm_to_vmem [thread:$0]  %s18_s25, 256, %s20_s29, [#allocation4], %s499_s30, %s499_s30, %s500_s6  }
   0x9   :  { %s501_s9 = smov [#allocation8]  }
   0xa   :  { %s47_s0 = sshll.u32 %s501_s9, 4  ;;  %s48_s0 = int_to_ptr.vmem [resolvable:$true] %s47_s0 }
   0xb   :  { %53 = dma.hbm_to_vmem [thread:$0]  %s46_s8, 1024, %s48_s0, [#allocation7], %s496_s26, %s496_s26, %s497_s27  }
   0xc   :  { %489 = dma.done.wait [#allocation4], 256  }
   0xd   :  { %490 = vsyncadd [#allocation4], 4294967040 }
   0xe   :  { %491 = dma.done.wait [#allocation7], 2048  }
   0xf   :  { %492 = vsyncadd [#allocation7], 4294965248  ;;  %v370_v0 = vld [vmem:[#allocation6 + $0x38] sm:$0xff]  ;;  %v369_v1 = vld [vmem:[#allocation6 + $0x30] sm:$0xff]  ;;  %s502_s12 = smov [#allocation9]   ;;  %s285_s16 = sshll.u32 %s562_s5, 4  ;;  %s286_s16 = int_to_ptr.hbm [resolvable:$true] %s285_s16 }
  0x10   :  { %139 = vmatpush.bf16.msra.mxu0 %v370_v0  ;;  %v368_v2 = vld [vmem:[#allocation6 + $0x28] sm:$0xff]  ;;  %v367_v3 = vld [vmem:[#allocation6 + $0x20] sm:$0xff]  ;;  %v366_v4 = vld [vmem:[#allocation6 + $0x18] sm:$0xff]  ;;  %s283_s13 = sshll.u32 %s502_s12, 4  ;;  %s284_s13 = int_to_ptr.vmem [resolvable:$true] %s283_s13 }
  0x11   :  { %v365_v5 = vld [vmem:[#allocation6 + $0x10] sm:$0xff]  ;;  %v364_v6 = vld [vmem:[#allocation6 + $0x8] sm:$0xff]  ;;  %v363_v7 = vld [vmem:[#allocation6] sm:$0xff] }
  0x12   :  { %v68_v8 = vld [vmem:[#allocation3] sm:$0xff]  ;;  %v69_v9 = vld [vmem:[#allocation3 + $0x8] sm:$0xff]  ;;  %v376_v13 = vld [vmem:[#allocation8 + $0x28] sm:$0xff] }
  0x13   :  { %v70_v10 = vpack.c.bf16 %v69_v9, %v68_v8  ;;  %v378_v11 = vld [vmem:[#allocation8 + $0x38] sm:$0xff]  ;;  %v377_v12 = vld [vmem:[#allocation8 + $0x30] sm:$0xff]  ;;  %v375_v14 = vld [vmem:[#allocation8 + $0x20] sm:$0xff] }
  0x14   :  { %140 = vmatpush.bf16.msra.mxu0 %v369_v1  ;;  %236 = vmatpush.bf16.msra.mxu1 %v378_v11  ;;  %v374_v15 = vld [vmem:[#allocation8 + $0x18] sm:$0xff]  ;;  %v373_v16 = vld [vmem:[#allocation8 + $0x10] sm:$0xff]  ;;  %v372_v17 = vld [vmem:[#allocation8 + $0x8] sm:$0xff] }
  0x15   :  { %v387_v18 = vld [vmem:[%s559_s2] ss:$0 sm:$0xff]  ;;  %v371_v19 = vld [vmem:[#allocation8] sm:$0xff] }
  0x16   :  { %v388_v43 = vld [vmem:[%s561_s4] ss:$0 sm:$0xff] }
  0x18   :  { %141 = vmatpush.bf16.msra.mxu0 %v368_v2  ;;  %237 = vmatpush.bf16.msra.mxu1 %v377_v12 }
  0x1c   :  { %142 = vmatpush.bf16.msra.mxu0 %v367_v3  ;;  %238 = vmatpush.bf16.msra.mxu1 %v376_v13 }
  0x20   :  { %143 = vmatpush.bf16.msra.mxu0 %v366_v4  ;;  %239 = vmatpush.bf16.msra.mxu1 %v375_v14 }
  0x24   :  { %144 = vmatpush.bf16.msra.mxu0 %v365_v5  ;;  %240 = vmatpush.bf16.msra.mxu1 %v374_v15 }
  0x28   :  { %145 = vmatpush.bf16.msra.mxu0 %v364_v6  ;;  %241 = vmatpush.bf16.msra.mxu1 %v373_v16 }
  0x2c   :  { %146 = vmatpush.bf16.msra.mxu0 %v363_v7  ;;  %242 = vmatpush.bf16.msra.mxu1 %v372_v17 }
  0x2f   :  { %147 = vmatmul.bf16.vlgmr.msra.gmra.mxu0 %v70_v10 }
  0x30   :  { %243 = vmatpush.bf16.msra.mxu1 %v371_v19 }
  0xac   :  { %v148_v20 = vpop.f32.mrf.mxu0 }
  0xad   :  { %v149_v21 = vadd.f32 %v387_v18, %v148_v20 }
  0xaf   :  { %v153_v22 = vmul.f32 %v149_v21, %v149_v21 }
  0xb1   :  { %v155_v23 = vmul.f32 %v153_v22, %v149_v21 }
  0xb3   :  { %v157_v24 = vmul.f32 0.044715, %v155_v23 }
  0xb4   :  { %v150_v25 = vpop.f32.mrf.mxu0 }
  0xb5   :  { %v159_v26 = vadd.f32 %v157_v24, %v149_v21  ;;  %v151_v27 = vadd.f32 %v387_v18, %v150_v25 }
  0xb7   :  { %v154_v28 = vmul.f32 %v151_v27, %v151_v27  ;;  %v161_v29 = vmul.f32 0.7978846, %v159_v26 }
  0xb9   :  { %v156_v30 = vmul.f32 %v154_v28, %v151_v27  ;;  %389 = vtanh.f32 %v161_v29 }
  0xbb   :  { %v158_v31 = vmul.f32 0.044715, %v156_v30 }
  0xbd   :  { %v160_v32 = vadd.f32 %v158_v31, %v151_v27 }
  0xbf   :  { %v162_v33 = vmul.f32 0.7978846, %v160_v32  ;;  %v390_v34 = vpop.eup %389 }
  0xc0   :  { %v165_v35 = vadd.f32 1.0, %v390_v34 }
  0xc1   :  { %391 = vtanh.f32 %v162_v33 }
  0xc2   :  { %v167_v38 = vmul.f32 0.5, %v165_v35 }
  0xc4   :  { %v169_v40 = vmul.f32 %v167_v38, %v149_v21 }
  0xc7   :  { %v392_v36 = vpop.eup %391 }
  0xc8   :  { %v166_v37 = vadd.f32 1.0, %v392_v36 }
  0xca   :  { %v168_v39 = vmul.f32 0.5, %v166_v37 }
  0xcc   :  { %v170_v41 = vmul.f32 %v168_v39, %v151_v27 }
  0xce   :  { %v171_v42 = vpack.c.bf16 %v170_v41, %v169_v40 }
  0xd0   :  { %244 = vmatmul.bf16.vlgmr.msra.gmra.mxu1 %v171_v42 }
 0x14d   :  { %v245_v44 = vpop.f32.mrf.mxu1 }
 0x14e   :  { %v275_v45 = vadd.f32 %v388_v43, %v245_v44 }
 0x150   :  { %277 = vst [vmem:[#allocation9] sm:$0xff] %v275_v45 }
 0x155   :  { %v247_v46 = vpop.f32.mrf.mxu1 }
 0x156   :  { %v276_v47 = vadd.f32 %v388_v43, %v247_v46 }
 0x158   :  { %278 = vst [vmem:[#allocation9 + $0x8] sm:$0xff] %v276_v47 }
 0x159   :  { %291 = dma.vmem_to_hbm [thread:$0]  %s284_s13, 256, %s286_s16, [#allocation5], %s499_s30, %s499_s30, %s500_s6  }
 0x15a   :  { %493 = dma.done.wait [#allocation5], 256  }
 0x15b   :  { %494 = vsyncadd [#allocation5], 4294967040 }
 0x15c   :  { %296 = vsyncpa [#allocation4], 1 }
 0x15d   :  { %297 = vsyncpa [#allocation7], 1 }
 0x15e   :  { %298 = vsyncpa [#allocation5], 1 }

</bundles_post_ra>
